<compile_context>
chip_gen: v7x
topology: tpu7x:2x2x1
jax: 0.10.0
libtpu: 0.0.40
codegen_flags: <defaults>
</compile_context>

<pallas_src>
import functools

import jax
import jax.numpy as jnp
from jax.experimental import pallas as pl
from jax.experimental.pallas import tpu as pltpu

# Padding logit: sigmoid(-1e4) == 0 and the stable BCE term with target 0 is
# exactly 0, so padded elements contribute nothing to any partial sum.
_PAD_LOGIT = -1e4


def _dice_bce_partials_kernel(x_ref, t_ref, out_ref, *, accumulate):
    """Per-tile partial sums for SoftDice(sigmoid) + BCEWithLogits.

    Produces a (tile_rows, 128) lane-dense block:
      lane 0: per-row sum(p * t)          (dice numerator partial)
      lane 1: per-row sum(p + t)          (dice denominator partial, fused)
      lane 2: per-row sum(bce elementwise)
    If `accumulate`, the block is accumulated into a resident output tile
    across the column grid axis; otherwise it is written per grid cell.
    """
    x = x_ref[...].astype(jnp.float32)
    t = t_ref[...].astype(jnp.float32)

    # Shared transcendental: e = exp(-|x|) feeds both the numerically stable
    # BCE log term and the sigmoid (EUP has a single VLIW slot).
    e = jnp.exp(-jnp.abs(x))
    log1pe = jnp.log1p(e)

    # BCEWithLogitsLoss (stable): max(x,0) - x*t + log1p(exp(-|x|))
    bce = jnp.maximum(x, 0.0) - x * t + log1pe

    # sigmoid(x) from the same e:  x>=0 -> 1/(1+e),  x<0 -> e/(1+e).
    # approx reciprocal: EUP rcp without Newton refinement (dice path only).
    inv1pe = pl.reciprocal(1.0 + e, approx=True)
    p = jnp.where(x >= 0.0, inv1pe, e * inv1pe)

    inter = jnp.sum(p * t, axis=-1, keepdims=True)   # (tr, 1)
    denom = jnp.sum(p + t, axis=-1, keepdims=True)   # (tr, 1) fused psum+tsum
    bce_s = jnp.sum(bce, axis=-1, keepdims=True)     # (tr, 1)

    tr = out_ref.shape[0]
    lane = jax.lax.broadcasted_iota(jnp.int32, (tr, 128), 1)
    block = (jnp.where(lane == 0, inter, 0.0)
             + jnp.where(lane == 1, denom, 0.0)
             + jnp.where(lane == 2, bce_s, 0.0))

    if accumulate:
        @pl.when(pl.program_id(1) == 0)
        def _():
            out_ref[...] = jnp.zeros_like(out_ref)
        out_ref[...] += block
    else:
        out_ref[...] = block


def _largest_divisor_tile(dim, unit, cap):
    """Largest multiple of `unit` dividing `dim`, <= cap (requires dim % unit == 0)."""
    t = min(dim, max(unit, (cap // unit) * unit))
    t -= t % unit
    while t > unit and dim % t:
        t -= unit
    return max(t, unit)


def _sublane_unit(dtype):
    """Second-to-last-dim packing unit for the given dtype (f32->8, bf16->16, i8->32)."""
    return {4: 8, 2: 16, 1: 32}.get(jnp.dtype(dtype).itemsize, 8)


def combined_loss(inputs, targets, *, weights=(0.5, 0.5), eps=1e-6,
                  target_block_bytes=2 * 1024 * 1024, max_tile_rows=256):
    """weights = (w_dice, w_bce).  inputs/targets: NCHW logits / {0,1}."""
    w_dice, w_bce = float(weights[0]), float(weights[1])
    n, c, h, w = inputs.shape
    rows, cols = n * c, h * w

    # No wrapper-side dtype casts: logits/targets stream at their native width
    # (the kernel upcasts per tile), so bf16 inputs halve HBM traffic for free.
    x2 = inputs.reshape(rows, cols)
    t2 = targets.reshape(rows, cols)

    row_unit = max(_sublane_unit(x2.dtype), _sublane_unit(t2.dtype))

    # Pad (only when necessary) so both axes always tile cleanly; padded
    # elements (x=-1e4, t=0) contribute exactly zero to all three partials,
    # and padded rows are sliced away in the epilogue.
    rows_p = -(-rows // row_unit) * row_unit
    cols_p = -(-cols // 128) * 128
    if rows_p != rows or cols_p != cols:
        x2 = jnp.pad(x2, ((0, rows_p - rows), (0, cols_p - cols)),
                     constant_values=_PAD_LOGIT)
        t2 = jnp.pad(t2, ((0, rows_p - rows), (0, cols_p - cols)),
                     constant_values=0)

    # Byte-budget tiling: ~2 MiB (f32) per input block keeps the ~0.35 us
    # per-grid-step overhead negligible even when rows = N*C is small, while
    # 2 inputs x 2 pipeline buffers + f32 temporaries stay well under VMEM.
    budget_elems = max(128 * row_unit, target_block_bytes // 4)
    tile_rows = _largest_divisor_tile(rows_p, row_unit, max_tile_rows)
    tile_cols = _largest_divisor_tile(cols_p, 128,
                                      max(128, budget_elems // tile_rows))

    r_blocks = rows_p // tile_rows
    c_blocks = cols_p // tile_cols

    # v7x has 2 TensorCores: keep at least 2 blocks on a parallel axis.
    if r_blocks == 1 and c_blocks == 1 and cols_p >= 2 * 128:
        tile_cols = _largest_divisor_tile(cols_p, 128, cols_p // 2)
        c_blocks = cols_p // tile_cols

    # Resident accumulator over the column axis whenever the row axis alone
    # still yields >= 2 parallel blocks (cuts output writeback by c_blocks x
    # and drops the epilogue column-sum); otherwise keep both axes parallel so
    # the column axis can shard across v7x's two TensorCores.
    use_accum = (r_blocks >= 2) or (c_blocks == 1)

    kernel = functools.partial(_dice_bce_partials_kernel, accumulate=use_accum)

    if use_accum:
        out_shape = jax.ShapeDtypeStruct((rows_p, 128), jnp.float32)
        out_spec = pl.BlockSpec((tile_rows, 128), lambda i, j: (i, 0))
        semantics = ("parallel", "arbitrary")
    else:
        out_shape = jax.ShapeDtypeStruct((rows_p, c_blocks * 128), jnp.float32)
        out_spec = pl.BlockSpec((tile_rows, 128), lambda i, j: (i, j))
        semantics = ("parallel", "parallel")

    out = pl.pallas_call(
        kernel,
        out_shape=out_shape,
        grid_spec=pltpu.PrefetchScalarGridSpec(
            num_scalar_prefetch=0,
            grid=(r_blocks, c_blocks),
            in_specs=[
                pl.BlockSpec((tile_rows, tile_cols), lambda i, j: (i, j)),
                pl.BlockSpec((tile_rows, tile_cols), lambda i, j: (i, j)),
            ],
            out_specs=out_spec,
        ),
        compiler_params=pltpu.CompilerParams(
            dimension_semantics=semantics,
            # Headroom under v7x's 64 MiB physical VMEM per TC; safely above
            # every generation's scoped default for these block sizes.
            vmem_limit_bytes=48 * 1024 * 1024),
    )(x2, t2)

    # Tiny O(rows) epilogue in plain JAX: dice ratio, means, weighted combine.
    if use_accum:
        inter = out[:rows, 0]
        denom = out[:rows, 1]
        bce_sum = jnp.sum(out[:rows, 2])
    else:
        parts = out.reshape(rows_p, c_blocks, 128)[:rows]
        inter = jnp.sum(parts[:, :, 0], axis=1)
        denom = jnp.sum(parts[:, :, 1], axis=1)
        bce_sum = jnp.sum(parts[:, :, 2])

    dice = (2.0 * inter + eps) / (denom + eps)
    dice_loss = jnp.mean(1.0 - dice)
    bce_loss = bce_sum / float(rows * cols)
    return w_dice * dice_loss + w_bce * bce_loss


def _reference_loss(inputs, targets, weights=(0.5, 0.5), eps=1e-6):
    """Plain-JAX reference: 0.5 * SoftDice(sigmoid) + 0.5 * BCEWithLogits."""
    n, c, h, w = inputs.shape
    x = inputs.reshape(n * c, h * w).astype(jnp.float32)
    t = targets.reshape(n * c, h * w).astype(jnp.float32)
    bce = jnp.mean(jnp.maximum(x, 0.0) - x * t + jnp.log1p(jnp.exp(-jnp.abs(x))))
    p = jax.nn.sigmoid(x)
    dice = (2.0 * jnp.sum(p * t, -1) + eps) / (jnp.sum(p, -1) + jnp.sum(t, -1) + eps)
    dice_loss = jnp.mean(1.0 - dice)
    return weights[0] * dice_loss + weights[1] * bce


if __name__ == "__main__":
    key = jax.random.PRNGKey(0)
    kx, kt = jax.random.split(key)

    # Small shapes consistent with a segmentation loss: batch=2, channels=4,
    # spatial=16x16.
    x = jax.random.normal(kx, (2, 4, 16, 16), dtype=jnp.float32)
    t = jax.random.bernoulli(kt, p=0.3, shape=(2, 4, 16, 16)).astype(jnp.float32)

    loss = jax.block_until_ready(combined_loss(x, t, weights=(0.5, 0.5)))
    ref = jax.block_until_ready(_reference_loss(x, t, weights=(0.5, 0.5)))

    # Tolerance loosened vs. exact f32 because the dice/sigmoid path uses the
    # approximate EUP reciprocal (pl.reciprocal(approx=True)).
    assert jnp.allclose(loss, ref, atol=2e-3, rtol=2e-3), (loss, ref)
    print("KERNEL_OK")
</pallas_src>

<mosaic_0001>
module attributes {stable_mosaic.version = 11 : i64} {
  func.func @_dice_bce_partials_kernel(%arg0: i32, %arg1: i32, %arg2: memref<8x128xf32, #tpu.memory_space<vmem>>, %arg3: memref<8x128xf32, #tpu.memory_space<vmem>>, %arg4: memref<8x128xf32, #tpu.memory_space<vmem>>) attributes {dimension_semantics = [#tpu.dimension_semantics<parallel>, #tpu.dimension_semantics<parallel>], iteration_bounds = array<i64: 1, 2>, scalar_prefetch = 0 : i64, scratch_operands = 0 : i64, tpu.core_type = #tpu.core_type<tc>, window_params = [{transform_indices = @transform_0, window_bounds = array<i64: 8, 128>}, {transform_indices = @transform_1, window_bounds = array<i64: 8, 128>}, {transform_indices = @transform_2, window_bounds = array<i64: 8, 128>}]} {
    %c0 = arith.constant 0 : index
    %c0_0 = arith.constant 0 : index
    %0 = vector.load %arg2[%c0, %c0_0] : memref<8x128xf32, #tpu.memory_space<vmem>>, vector<8x128xf32>
    %c0_1 = arith.constant 0 : index
    %c0_2 = arith.constant 0 : index
    %1 = vector.load %arg3[%c0_1, %c0_2] : memref<8x128xf32, #tpu.memory_space<vmem>>, vector<8x128xf32>
    %2 = math.absf %0 : vector<8x128xf32>
    %cst = arith.constant 0.000000e+00 : f32
    %3 = vector.broadcast %cst : f32 to vector<8x128xf32>
    %4 = arith.subf %3, %2 : vector<8x128xf32>
    %5 = math.exp %4 : vector<8x128xf32>
    %6 = math.log1p %5 : vector<8x128xf32>
    %cst_3 = arith.constant 0.000000e+00 : f32
    %7 = vector.broadcast %cst_3 : f32 to vector<8x128xf32>
    %8 = arith.maximumf %0, %7 : vector<8x128xf32>
    %9 = arith.mulf %0, %1 : vector<8x128xf32>
    %10 = arith.subf %8, %9 : vector<8x128xf32>
    %11 = arith.addf %10, %6 : vector<8x128xf32>
    %cst_4 = arith.constant 1.000000e+00 : f32
    %12 = vector.broadcast %cst_4 : f32 to vector<8x128xf32>
    %13 = arith.addf %12, %5 : vector<8x128xf32>
    %14 = tpu.reciprocal %13 {approx = true} : vector<8x128xf32> -> vector<8x128xf32>
    %cst_5 = arith.constant 0.000000e+00 : f32
    %15 = vector.broadcast %cst_5 : f32 to vector<8x128xf32>
    %16 = arith.cmpf oge, %0, %15 : vector<8x128xf32>
    %17 = arith.mulf %5, %14 : vector<8x128xf32>
    %18 = arith.select %16, %14, %17 : vector<8x128xi1>, vector<8x128xf32>
    %19 = arith.mulf %18, %1 : vector<8x128xf32>
    %cst_6 = arith.constant dense<0.000000e+00> : vector<8xf32>
    %20 = vector.multi_reduction <add>, %19, %cst_6 [1] : vector<8x128xf32> to vector<8xf32>
    %21 = vector.shape_cast %20 : vector<8xf32> to vector<8x1xf32>
    %22 = arith.addf %18, %1 : vector<8x128xf32>
    %cst_7 = arith.constant dense<0.000000e+00> : vector<8xf32>
    %23 = vector.multi_reduction <add>, %22, %cst_7 [1] : vector<8x128xf32> to vector<8xf32>
    %24 = vector.shape_cast %23 : vector<8xf32> to vector<8x1xf32>
    %cst_8 = arith.constant dense<0.000000e+00> : vector<8xf32>
    %25 = vector.multi_reduction <add>, %11, %cst_8 [1] : vector<8x128xf32> to vector<8xf32>
    %26 = vector.shape_cast %25 : vector<8xf32> to vector<8x1xf32>
    %27 = tpu.iota {dimensions = array<i32: 1>} : vector<8x128xi32>
    %c0_i32 = arith.constant 0 : i32
    %28 = vector.broadcast %c0_i32 : i32 to vector<8x128xi32>
    %29 = arith.cmpi eq, %27, %28 : vector<8x128xi32>
    %cst_9 = arith.constant 0.000000e+00 : f32
    %30 = vector.shape_cast %21 : vector<8x1xf32> to vector<8x1xf32>
    %31 = vector.broadcast %30 : vector<8x1xf32> to vector<8x128xf32>
    %32 = vector.broadcast %cst_9 : f32 to vector<8x128xf32>
    %33 = arith.select %29, %31, %32 : vector<8x128xi1>, vector<8x128xf32>
    %c1_i32 = arith.constant 1 : i32
    %34 = vector.broadcast %c1_i32 : i32 to vector<8x128xi32>
    %35 = arith.cmpi eq, %27, %34 : vector<8x128xi32>
    %cst_10 = arith.constant 0.000000e+00 : f32
    %36 = vector.shape_cast %24 : vector<8x1xf32> to vector<8x1xf32>
    %37 = vector.broadcast %36 : vector<8x1xf32> to vector<8x128xf32>
    %38 = vector.broadcast %cst_10 : f32 to vector<8x128xf32>
    %39 = arith.select %35, %37, %38 : vector<8x128xi1>, vector<8x128xf32>
    %40 = arith.addf %33, %39 : vector<8x128xf32>
    %c2_i32 = arith.constant 2 : i32
    %41 = vector.broadcast %c2_i32 : i32 to vector<8x128xi32>
    %42 = arith.cmpi eq, %27, %41 : vector<8x128xi32>
    %cst_11 = arith.constant 0.000000e+00 : f32
    %43 = vector.shape_cast %26 : vector<8x1xf32> to vector<8x1xf32>
    %44 = vector.broadcast %43 : vector<8x1xf32> to vector<8x128xf32>
    %45 = vector.broadcast %cst_11 : f32 to vector<8x128xf32>
    %46 = arith.select %42, %44, %45 : vector<8x128xi1>, vector<8x128xf32>
    %47 = arith.addf %40, %46 : vector<8x128xf32>
    %c0_12 = arith.constant 0 : index
    %c0_13 = arith.constant 0 : index
    %48 = vector.load %arg4[%c0_12, %c0_13] : memref<8x128xf32, #tpu.memory_space<vmem>>, vector<8x128xf32>
    tpu.vector_store %arg4[%c0_12, %c0_13], %47 {strides = array<i32>} : memref<8x128xf32, #tpu.memory_space<vmem>>, vector<8x128xf32>,
    return
  }
  func.func @transform_0(%arg0: i32, %arg1: i32) -> (i32, i32) {
    %c0_i32 = arith.constant 0 : i32
    return %arg0, %arg1 : i32, i32
  }
  func.func @transform_1(%arg0: i32, %arg1: i32) -> (i32, i32) {
    %c0_i32 = arith.constant 0 : i32
    return %arg0, %arg1 : i32, i32
  }
  func.func @transform_2(%arg0: i32, %arg1: i32) -> (i32, i32) {
    %c0_i32 = arith.constant 0 : i32
    return %arg0, %arg1 : i32, i32
  }
}

</mosaic_0001>

<bundles_post_ra>
// kernel: tpu_custom_call.1
= control target key start
LH: loop header
LB: loop body
LE: loop exit
PB: predicated region body
PF: predicated region fallthrough
CT: control target
= control target key end

     0   :  { %7 = vsyncpa [#allocation3], 0  ;;  %s864_s0 = inlined_call_operand.hbm [shape: f32[8,256], index: 0, kind: input, shape index: {}]   ;;  %s865_s1 = inlined_call_operand.hbm [shape: f32[8,256], index: 1, kind: input, shape index: {}]   ;;  %s866_s2 = inlined_call_operand.hbm [shape: f32[8,256], index: 2, kind: output, shape index: {}]  }
   0x1   :  { %9 = vsyncpa [#allocation3 + $0x1], 0 }
   0x2   :  { %10 = vsyncpa [#allocation6], 0 }
   0x3   :  { %12 = vsyncpa [#allocation6 + $0x1], 0 }
   0x4   :  { %13 = vsyncpa [#allocation4], 0 }
   0x5   :  { %15 = vsyncpa [#allocation4 + $0x1], 0  ;;  %s639_s9 = smov 0   ;;  %s641_s10 = smov 0  }
   0x6   :  { %s643_s11 = smov 0   ;;  %s645_s12 = smov 0  }
   0x7   :  { %s647_s13 = smov 0   ;;  %s649_s14 = smov 0  }
   0x8 LB: > { %s384_s15 = sadd.s32 4294967295, %s619_s14   ;;  %s385_s16 = sadd.s32 4294967294, %s619_s14   ;;  %s619_s14 = sphi %s649_s14, %s21_s14   ;;  %s615_s13 = sphi %s647_s13, %s886_s13   ;;  %s611_s12 = sphi %s645_s12, %s885_s12   ;;  %s607_s11 = sphi %s643_s11, %s884_s11   ;;  %s603_s10 = sphi %s641_s10, %s883_s10   ;;  %s599_s9 = sphi %s639_s9, %s882_s9  }
   0x9   : > { %s30_s17 = sadd.s32 1, %s615_s13  ;;  %s42_s18 = sadd.s32 1, %s607_s11 }
   0xa   : > { %p31_p0 = scmp.ge.s32.totalorder %s30_s17, 2  ;;  %p49_p1 = scmp.ne.s32.totalorder %s607_s11, %s603_s10 }
   0xb   : > { %p50_p2 = scmp.eq.s32.totalorder %s619_s14, 0  ;;  %p55_p3 = scmp.ne.s32.totalorder %s603_s10, %s599_s9 }
   0xc   : > { %s888_s17 = smov (%p31_p0, %s30_s17), 0  ;;  %p56_p5 = scmp.eq.s32.totalorder %s384_s15, 0 }
   0xd   : > { %p680_p4 = por %p50_p2, %p49_p1  ;;  %s38_s20 = ssub.s32 %s615_s13, %s888_s17 }
   0xe   : > { %p109_p6 = scmp.eq.s32.totalorder %s384_s15, 1  ;;  %p40_p7 = scmp.eq.s32.totalorder %s38_s20, 0 }
   0xf   : > { %p686_p8 = por %p56_p5, %p55_p3  ;;  %p115_p10 = scmp.eq.s32.totalorder %s385_s16, 1 }
  0x10   : > { %p690_p9 = por %p109_p6, %p49_p1  ;;  %p417_p13 = scmp.lt.s32.totalorder %s619_s14, 2 }
  0x11   : > { %s870_s21 = scalar_select %p686_p8, 1, 0 }
  0x12   : > { %s871_s22 = scalar_select %p690_p9, 1, 0 }
  0x13   : > { %s695_s23 = scalar_select %p40_p7, %s607_s11, %s42_s18  }
  0x14   : > { %p697_p11 = por %p115_p10, %p55_p3  ;;  %s704_s25 = sand.u32 1, %s607_s11  }
  0x15   : > { %s388_s26 = sshll.u32 %s704_s25, 3  ;;  %s389_s27 = sshll.u32 %s615_s13, 7 }
  0x16   : > { %s872_s24 = scalar_select %p697_p11, 1, 0 }
  0x17   : > { %s713_s30 = scalar_lea.hbm %s864_s0, %s389_s27  ;;  %s139_s3 = scalar_lea.vmem [#allocation2], %s388_s26 }
  0x18   : > { %s148_s4 = sshll.u32 %s139_s3, 4  ;;  %p721_p0 = pnand %p417_p13, %p680_p4  ;;  %s717_s4 = int_to_ptr.vmem [resolvable:$true] %s148_s4 }
  0x19   : > { %s136_s6 = scalar_lea.sflag [#allocation3], %s704_s25  ;;  %s473_s7 = scalar_lea.hbm %s713_s30, 128 }
  0x1a   : > { %p474_p3 = scmp.ne.s32.totalorder %s713_s30, %s473_s7  ;;  %p475_p5 = pneg %p721_p0 }
  0x1b   : > { %s478_s16 = scalar_lea.hbm %s864_s0, 256  ;;  %p479_p4 = scmp.lt.u32.totalorder %s713_s30, %s864_s0 }
  0x1c   : > { %p476_p6 = pnand %p475_p5, %p474_p3  ;;  %p480_p10 = scmp.lt.u32.totalorder %s478_s16, %s473_s7 }
  0x1d   : > { %p482_p12 = scmp.lt.u32.totalorder %s473_s7, %s713_s30 }
  0x1e   : > { %p477_p7 = pneg %p476_p6  ;;  %p481_p13 = por %p480_p10, %p479_p4 }
  0x20   : > { %p483_p1 = por %p482_p12, %p481_p13 }
  0x22   : > { %p484_p2 = pnand %p483_p1, %p477_p7 }
  0x24   : > { %487 = shalt.err (!%p484_p2)
}
  0x25   : > { %s488_s20 = scalar_lea.vmem %s717_s4, 128  ;;  %s621_s28 = smov [#allocation2]  }
  0x26   : > { %p489_p3 = scmp.ne.s32.totalorder %s717_s4, %s488_s20  ;;  %s493_s29 = sshll.u32 %s621_s28, 4  ;;  %s494_s29 = int_to_ptr.vmem [resolvable:$false] %s493_s29 }
  0x27   : > { %s495_s3 = scalar_lea.vmem %s494_s29, 256  ;;  %p496_p9 = scmp.lt.s32.totalorder %s717_s4, %s494_s29 }
  0x28   : > { %p491_p6 = pnand %p489_p3, %p475_p5  ;;  %p497_p4 = scmp.lt.s32.totalorder %s495_s3, %s488_s20 }
  0x2a   : > { %p492_p11 = pneg %p491_p6  ;;  %p498_p10 = por %p497_p4, %p496_p9 }
  0x2c   : > { %p499_p12 = pnand %p498_p10, %p492_p11 }
  0x2e   : > { %502 = shalt.err (!%p499_p12)
}
  0x2f   : > { %409 = dma.hbm_to_vmem [thread:$0]  (!%p721_p0), %s713_s30, 128, %s717_s4, %s136_s6  }
  0x30   : > { %p874_p1 = scmp.lt.s32.totalorder %s619_s14, 3  ;;  %p875_p2 = scmp.ge.s32.totalorder %s619_s14, 1 }
  0x31   : > { %s766_s16 = scalar_lea.hbm %s865_s1, %s389_s27  ;;  %s159_s18 = scalar_lea.vmem [#allocation5], %s388_s26 }
  0x32   : > { %p757_p7 = pnand %p875_p2, %p874_p1  ;;  %s168_s19 = sshll.u32 %s159_s18, 4  ;;  %s169_s19 = int_to_ptr.vmem [resolvable:$true] %s168_s19 }
  0x33   : > { %s156_s30 = scalar_lea.sflag [#allocation6], %s704_s25  ;;  %s503_s4 = scalar_lea.hbm %s766_s16, 128 }
  0x34   : > { %s876_s7 = scalar_select %p757_p7, 1, 0 }
  0x35   : > { %p504_p9 = scmp.ne.s32.totalorder %s766_s16, %s503_s4  ;;  %s508_s27 = scalar_lea.hbm %s865_s1, 256 }
  0x36   : > { %p509_p3 = scmp.lt.u32.totalorder %s766_s16, %s865_s1  ;;  %p510_p6 = scmp.lt.u32.totalorder %s508_s27, %s503_s4 }
  0x37   : > { %p506_p11 = pnand %p504_p9, %p475_p5  ;;  %p512_p10 = scmp.lt.u32.totalorder %s503_s4, %s766_s16 }
  0x38   : > { %p511_p4 = por %p510_p6, %p509_p3 }
  0x39   : > { %p507_p13 = pneg %p506_p11 }
  0x3a   : > { %p513_p12 = por %p512_p10, %p511_p4 }
  0x3c   : > { %p514_p1 = pnand %p513_p12, %p507_p13 }
  0x3e   : > { %517 = shalt.err (!%p514_p1)
}
  0x3f   : > { %s518_s25 = scalar_lea.vmem %s169_s19, 128  ;;  %s622_s26 = smov [#allocation5]  }
  0x40   : > { %p519_p2 = scmp.ne.s32.totalorder %s169_s19, %s518_s25  ;;  %s523_s3 = sshll.u32 %s622_s26, 4  ;;  %s524_s3 = int_to_ptr.vmem [resolvable:$false] %s523_s3 }
  0x41   : > { %s525_s8 = scalar_lea.vmem %s524_s3, 256  ;;  %p526_p8 = scmp.lt.s32.totalorder %s169_s19, %s524_s3 }
  0x42   : > { %p521_p9 = pnand %p519_p2, %p475_p5  ;;  %p527_p7 = scmp.lt.s32.totalorder %s525_s8, %s518_s25 }
  0x44   : > { %p522_p11 = pneg %p521_p9  ;;  %p528_p3 = por %p527_p7, %p526_p8 }
  0x46   : > { %p529_p6 = pnand %p528_p3, %p522_p11 }
  0x48   : > { %532 = shalt.err (!%p529_p6)
}
  0x49   : > { %412 = dma.hbm_to_vmem [thread:$0]  (!%p721_p0), %s766_s16, 128, %s169_s19, %s156_s30  }
  0x4a   : > { %p877_p13 = scmp.ne.s32.totalorder %s876_s7, 0 }
  0x4b   : > { %s793_s15 = sand.u32 (!%p877_p13), 1, %s603_s10   ;;  %p878_p8 = scmp.ne.s32.totalorder (!%p877_p13), %s870_s21, 0 }
  0x4c   : > { %177 = sbr.rel (%p877_p13) target bundleno = 287 (0x11f), region = 28  ;;  %s796_s18 = sshll.u32 (!%p877_p13), %s793_s15, 3 }
  0x4d   : > { %s180_s4 = scalar_lea.sflag (!%p877_p13), [#allocation3], %s793_s15  ;;  %s183_s6 = scalar_lea.vmem (!%p877_p13), [#allocation2], %s796_s18 }
  0x53   : > { %586 = dma.done.wait (%p878_p8), %s180_s4, 128  }
  0x54   : > { %588 = vsyncadd (%p878_p8), %s180_s4, 4294967168  ;;  %s189_s5 = scalar_lea.sflag [#allocation6], %s793_s15  ;;  %s192_s7 = scalar_lea.vmem [#allocation5], %s796_s18 }
  0x55   : > { %590 = dma.done.wait (%p878_p8), %s189_s5, 128  }
  0x56   : > { %592 = vsyncadd (%p878_p8), %s189_s5, 4294967168  ;;  %v218_v0 = vld [vmem:[%s183_s6] sm:$0xff]  ;;  %v219_v7 = vld [vmem:[%s192_s7] sm:$0xff]  ;;  %v250_v23 = vlaneseq  ;;  %s397_s21 = sshll.u32 %s611_s12, 7  ;;  %s217_s16 = scalar_lea.vmem [#allocation7], %s796_s18 }
  0x57   : > { %v220_v1 = vand.u32 2147483647, %v218_v0  ;;  %v233_v10 = vmax.f32 %v218_v0, 0.0  ;;  %v234_v11 = vmul.f32 %v219_v7, %v218_v0  ;;  %vm239_vm0 = vcmp.ge.f32.partialorder %v218_v0, 0.0  ;;  %s277_s19 = sshll.u32 %s217_s16, 4  ;;  %s815_s27 = scalar_lea.hbm %s866_s2, %s397_s21  ;;  %s817_s19 = int_to_ptr.vmem [resolvable:$true] %s277_s19 }
  0x58   : > { %v251_v24 = vand.u32 127, %v250_v23  ;;  %s262_s28 = scalar_lea.sflag [#allocation4], %s793_s15  ;;  %s533_s29 = scalar_lea.vmem %s817_s19, 128 }
  0x59   : > { %v221_v2 = vsub.f32 0.0, %v220_v1  ;;  %v235_v16 = vsub.f32 %v233_v10, %v234_v11  ;;  %p534_p0 = scmp.ne.s32.totalorder %s817_s19, %s533_s29  ;;  %p879_p5 = scmp.ne.s32.totalorder %s871_s22, 0 }
  0x5a   : > { %vm252_vm2 = vcmp.eq.s32.totalorder %v251_v24, 0  ;;  %vm254_vm3 = vcmp.eq.s32.totalorder %v251_v24, 1  ;;  %vm257_vm4 = vcmp.eq.s32.totalorder %v251_v24, 2  ;;  %s623_s12 = smov [#allocation7]  }
  0x5b   : > { %v222_v3 = vmul.f32 1.442695, %v221_v2  ;;  %p535_p7 = pnand %p534_p0, %p879_p5  ;;  %s537_s25 = sshll.u32 %s623_s12, 4  ;;  %s538_s25 = int_to_ptr.vmem [resolvable:$false] %s537_s25 }
  0x5c   : > { %s539_s26 = scalar_lea.vmem %s538_s25, 256  ;;  %p540_p10 = scmp.lt.s32.totalorder %s817_s19, %s538_s25 }
  0x5d   : > { %467 = vpow2.f32 %v222_v3  ;;  %p536_p4 = pneg %p535_p7  ;;  %p541_p12 = scmp.lt.s32.totalorder %s539_s26, %s533_s29 }
  0x5f   : > { %p542_p1 = por %p541_p12, %p540_p10 }
  0x61   : > { %p543_p2 = pnand %p542_p1, %p536_p4 }
  0x67   : > { %v468_v4 = vpop.eup %467 }
  0x68   : > { %v224_v5 = vadd.f32 1.0, %v468_v4  ;;  %v227_v6 = vmul.f32 -0.5, %v468_v4  ;;  %v230_v9 = vand.u32 2147483647, %v468_v4 }
  0x6a   : > { %469 = vrcp.f32 %v224_v5  ;;  %v228_v8 = vadd.f32 1.0, %v227_v6  ;;  %vm231_vm1 = vcmp.lt.f32.partialorder %v230_v9, 0.0004427343 }
  0x6b   : > { %471 = vlog2.f32 %v224_v5 }
  0x6c   : > { %v229_v13 = vmul.f32 %v468_v4, %v228_v8 }
  0x74   : > { %v470_v12 = vpop.eup %469 }
  0x75   : > { %v472_v14 = vpop.eup %471  ;;  %v240_v15 = vmul.f32 %v470_v12, %v468_v4 }
  0x76   : > { %v226_v17 = vmul.f32 0.6931472, %v472_v14 }
  0x77   : > { %v241_v18 = vsel %vm239_vm0, %v470_v12, %v240_v15 }
  0x78   : > { %v242_v19 = vmul.f32 %v241_v18, %v219_v7  ;;  %v232_v20 = vsel %vm231_vm1, %v229_v13, %v226_v17  ;;  %v245_v22 = vadd.f32 %v241_v18, %v219_v7 }
  0x79   : > { %v236_v21 = vadd.f32 %v235_v16, %v232_v20 }
  0x7a   : > { %243 = vadd.xlane.f32.xlu0 %v242_v19 }
  0x7b   : > { %248 = vadd.xlane.f32.xlu1 %v236_v21 }
  0x7e   : > { %246 = vadd.xlane.f32.xlu0 %v245_v22 }
 0x107   : > { %v244_v25 = vpop.xlane.xlu0 %243 }
 0x108   : > { %v249_v26 = vpop.xlane.xlu1 %248  ;;  %v253_v28 = vsel %vm252_vm2, %v244_v25, 0.0 }
 0x109   : > { %v258_v30 = vsel %vm257_vm4, %v249_v26, 0.0 }
 0x10b   : > { %v247_v27 = vpop.xlane.xlu0 %246 }
 0x10c   : > { %v255_v29 = vsel %vm254_vm3, %v247_v27, 0.0 }
 0x10d   : > { %v256_v31 = vadd.f32 %v255_v29, %v253_v28 }
 0x10f   : > { %v259_v32 = vadd.f32 %v258_v30, %v256_v31 }
 0x111   : > { %260 = vst [vmem:[%s217_s16] sm:$0xff] %v259_v32 }
 0x112   : > { %546 = shalt.err (!%p543_p2)
}
 0x113   : > { %s547_s3 = scalar_lea.hbm %s815_s27, 128  ;;  %s551_s18 = scalar_lea.hbm %s866_s2, 256 }
 0x114   : > { %p548_p9 = scmp.ne.s32.totalorder %s815_s27, %s547_s3  ;;  %p552_p6 = scmp.lt.u32.totalorder %s815_s27, %s866_s2 }
 0x115   : > { %p553_p13 = scmp.lt.u32.totalorder %s551_s18, %s547_s3  ;;  %p555_p0 = scmp.lt.u32.totalorder %s547_s3, %s815_s27 }
 0x116   : > { %p549_p11 = pnand %p548_p9, %p879_p5 }
 0x117   : > { %p554_p8 = por %p553_p13, %p552_p6 }
 0x118   : > { %p550_p3 = pneg %p549_p11 }
 0x119   : > { %p556_p7 = por %p555_p0, %p554_p8 }
 0x11b   : > { %p557_p4 = pnand %p556_p7, %p550_p3 }
 0x11d   : > { %560 = shalt.err (!%p557_p4)
}
 0x11e   : > { %404 = dma.vmem_to_hbm [thread:$0]  (%p879_p5), %s817_s19, 128, %s815_s27, %s262_s28  }
 0x11f PF: > { %s289_s5 = sand.u32 1, %s599_s9   ;;  %p880_p10 = scmp.ne.s32.totalorder %s872_s24, 0 }
 0x120   : > { %p881_p12 = scmp.ge.s32.totalorder %s619_s14, 2  ;;  %s290_s7 = scalar_lea.sflag [#allocation4], %s289_s5 }
 0x122   : > { %p414_p1 = pnand %p881_p12, %p880_p10 }
 0x124   : > { %594 = dma.done.wait (!%p414_p1), %s290_s7, 128  }
 0x125   : > { %596 = vsyncadd (!%p414_p1), %s290_s7, 4294967168  ;;  %s21_s14 = sadd.s32 1, %s619_s14   ;;  %s882_s9 = smov %s603_s10 }
 0x126   : > { %p18_p2 = scmp.ge.s32.totalorder %s21_s14, 4   ;;  %s883_s10 = smov %s607_s11 }
 0x127   : > { %s884_s11 = smov %s695_s23  ;;  %s885_s12 = smov %s615_s13 }
 0x128   : > { %s886_s13 = smov %s888_s17  ;;  %20 = sbr.rel (!%p18_p2) target bundleno = 8 (0x8), region = 86 }
 0x12f   :  { %295 = vsyncpa [#allocation3], 1 }
 0x130   :  { %297 = vsyncpa [#allocation3 + $0x1], 1 }
 0x131   :  { %298 = vsyncpa [#allocation6], 1 }
 0x132   :  { %300 = vsyncpa [#allocation6 + $0x1], 1 }
 0x133   :  { %301 = vsyncpa [#allocation4], 1 }
 0x134   :  { %303 = vsyncpa [#allocation4 + $0x1], 1 }

</bundles_post_ra>
